<compile_context>
chip_gen: v5e
topology: v5e:2x2
jax: 0.10.0
libtpu: 0.0.40
codegen_flags: <defaults>
</compile_context>

<pallas_src>
import functools

import jax
import jax.numpy as jnp
from jax.experimental import pallas as pl
from jax.experimental.pallas import tpu as pltpu


def _bilinear_matrix(out_size: int, in_size: int) -> jnp.ndarray:
    """A (out, in) s.t. A @ v == F.interpolate(v, mode='bilinear', align_corners=False) along one axis."""
    scale = in_size / out_size
    i = jnp.arange(out_size, dtype=jnp.float32)
    src = (i + 0.5) * scale - 0.5
    src = jnp.maximum(src, 0.0)  # PyTorch clamps negative source coords to 0
    x0 = jnp.minimum(jnp.floor(src).astype(jnp.int32), in_size - 1)
    x1 = jnp.minimum(x0 + 1, in_size - 1)
    frac = src - x0.astype(jnp.float32)
    rows = jnp.arange(out_size)
    a = jnp.zeros((out_size, in_size), jnp.float32)
    a = a.at[rows, x0].add(1.0 - frac)
    a = a.at[rows, x1].add(frac)
    return a


def _loss_kernel(n_classes, C, h, x_ref, ah_ref, awT_ref, lab_ref,
                 sum_ref, cnt_ref, u_ref):
    # x_ref:   (1, C*h, w)        logits, channels folded onto the sublane axis
    # ah_ref:  (tile_h, h)        height-interpolation rows for this tile
    # awT_ref: (w, W_pad)         width interpolation (transposed, zero-padded)
    # lab_ref: (1, tile_h, W_pad) int32 labels (-1 in padding)
    # u_ref:   (C*h, W_pad)       scratch: width-upsampled logits, resident per image
    t = pl.program_id(1)

    # Width upsample for ALL channels in ONE matmul, once per image.  The t
    # axis is sequential on a core, so the scratch stays valid for every tile.
    @pl.when(t == 0)
    def _():
        u_ref[...] = jnp.dot(
            x_ref[0], awT_ref[...],
            preferred_element_type=jnp.float32).astype(u_ref.dtype)

    ah = ah_ref[...]                      # (tile_h, h)
    lab = lab_ref[0]                      # (tile_h, W_pad) int32
    tile_h, w_pad = lab.shape

    def upsample(c):
        # Per-channel height upsample on an aligned SUBLANE slice of u.
        if isinstance(c, int):
            u_c = u_ref[c * h:(c + 1) * h, :]
        else:
            start = c * h
            if h % 8 == 0:
                start = pl.multiple_of(start, 8)
            u_c = u_ref[pl.ds(start, h), :]
        return jnp.dot(ah, u_c, preferred_element_type=jnp.float32)

    def body(c, carry):
        m, esum, picked = carry
        up_c = upsample(c)                            # (tile_h, W_pad) f32
        m_new = jnp.maximum(m, up_c)
        esum = esum * jnp.exp(m - m_new) + jnp.exp(up_c - m_new)
        picked = jnp.where(lab == c, up_c, picked)
        return m_new, esum, picked

    zero = jnp.zeros((tile_h, w_pad), jnp.float32)
    init = (jnp.full((tile_h, w_pad), -jnp.inf, jnp.float32), zero, zero)
    if C <= 32:
        carry = init
        for c in range(C):                            # unrolled: best LLO scheduling
            carry = body(c, carry)
        m, esum, picked = carry
    else:
        # Large class counts: bounded code size, dynamic sublane slice of u.
        m, esum, picked = jax.lax.fori_loop(0, C, body, init, unroll=4)

    lse = m + jnp.log(esum)
    valid = jnp.logical_and(lab >= 0, lab < n_classes)
    validf = valid.astype(jnp.float32)
    pix = (lse - picked) * validf

    # Lane-preserving partial reduction (sublane reduce only); the final
    # cross-lane reduce + division happen once in the wrapper.
    sum_ref[0, 0] = jnp.sum(pix, axis=0, keepdims=True)
    cnt_ref[0, 0] = jnp.sum(validf, axis=0, keepdims=True)


def _vmem_caps():
    """Generation-aware (working-set budget, vmem_limit) in bytes."""
    try:
        cap = int(pltpu.get_tpu_info().vmem_capacity_bytes)
    except Exception:
        cap = 64 * 1024 * 1024        # conservative fallback (v7x-class VMEM)
    return int(cap * 0.40), int(cap * 0.75)


def _pick_tile_h(H, C, h, w, W_pad, in_bytes, budget_bytes):
    """Largest multiple-of-8 row tile fitting the VMEM budget and a vreg-pressure cap."""
    u_bytes = C * h * W_pad * in_bytes                       # resident u scratch
    fixed = 2 * in_bytes * (C * h * w + w * W_pad) + u_bytes + (256 << 10)
    per_row = 2 * in_bytes * h + 2 * 4 * W_pad + 8 * 4 * W_pad
    avail = budget_bytes - fixed
    tile = 8 if avail < 8 * per_row else avail // per_row
    # vreg-pressure cap: keep one f32 (tile, W_pad) slab <= ~32 vregs so the
    # online-softmax phase does not flip into a spill-bound regime.
    tile = min(tile, max(8, (32 * 1024) // W_pad), 512)
    tile = max(8, (int(tile) // 8) * 8)
    return min(tile, -(-H // 8) * 8)


def linear_loss(linear_logits: jnp.ndarray, label: jnp.ndarray, n_classes: int) -> jnp.ndarray:
    N, C, h, w = linear_logits.shape
    assert C == n_classes
    H, W = label.shape[-2:]
    label = label.reshape(N, H, W).astype(jnp.int32)

    # bf16 logits stay bf16 through the MXU; everything else falls back to f32.
    in_dtype = jnp.bfloat16 if linear_logits.dtype == jnp.bfloat16 else jnp.float32
    in_bytes = 2 if in_dtype == jnp.bfloat16 else 4
    # (N, C, h, w) -> (N, C*h, w): channels onto the SUBLANE axis.
    x = linear_logits.astype(in_dtype).reshape(N, C * h, w)

    W_pad = max(128, -(-W // 128) * 128)                     # lane-dense stores
    budget, vmem_limit = _vmem_caps()
    tile_h = _pick_tile_h(H, C, h, w, W_pad, in_bytes, budget)
    nT = -(-H // tile_h)
    H_pad = nT * tile_h

    # Padding: extra output rows get zero interpolation weight, extra label
    # rows/cols are -1 (invalid) so they contribute nothing to sum or count.
    ah = jnp.pad(_bilinear_matrix(H, h), ((0, H_pad - H), (0, 0))).astype(in_dtype)
    awT = jnp.pad(_bilinear_matrix(W, w).T, ((0, 0), (0, W_pad - W))).astype(in_dtype)
    lab = jnp.pad(label, ((0, 0), (0, H_pad - H), (0, W_pad - W)), constant_values=-1)

    kernel = functools.partial(_loss_kernel, n_classes, C, h)
    sums, cnts = pl.pallas_call(
        kernel,
        out_shape=(jax.ShapeDtypeStruct((N, nT, 1, W_pad), jnp.float32),
                   jax.ShapeDtypeStruct((N, nT, 1, W_pad), jnp.float32)),
        grid_spec=pltpu.PrefetchScalarGridSpec(
            num_scalar_prefetch=0,
            grid=(N, nT),
            in_specs=[
                # TODO(synk): pipeline_mode=pl.Buffered(3) on this block would
                # prefetch the next image's logits earlier; kept at default
                # depth for guaranteed lowering.
                pl.BlockSpec((1, C * h, w), lambda n, t: (n, 0, 0)),   # resident over t
                pl.BlockSpec((tile_h, h), lambda n, t: (t, 0)),
                pl.BlockSpec((w, W_pad), lambda n, t: (0, 0)),
                pl.BlockSpec((1, tile_h, W_pad), lambda n, t: (n, t, 0)),
            ],
            out_specs=(
                pl.BlockSpec((1, 1, 1, W_pad), lambda n, t: (n, t, 0, 0)),
                pl.BlockSpec((1, 1, 1, W_pad), lambda n, t: (n, t, 0, 0)),
            ),
            scratch_shapes=[pltpu.VMEM((C * h, W_pad), in_dtype)],
        ),
        compiler_params=pltpu.CompilerParams(
            # t carries the per-image u scratch -> must stay sequential on one
            # core; megacore (v7x) splits the batch axis instead.
            dimension_semantics=("parallel", "arbitrary"),
            vmem_limit_bytes=vmem_limit),
    )(x, ah, awT, lab)

    # TODO(synk): divides by zero (NaN) when a batch has no valid labels,
    # matching the PyTorch/JAX reference semantics.
    return jnp.sum(sums) / jnp.sum(cnts)


def linear_loss_ref(linear_logits, label, n_classes):
    """Plain-JAX reference with the same interpolation matrices (mirrors the PyTorch forward)."""
    N, C, h, w = linear_logits.shape
    H, W = label.shape[-2:]
    ah = _bilinear_matrix(H, h)
    aw = _bilinear_matrix(W, w)
    up = jnp.einsum('Hh,nchw,Ww->nHWc', ah, linear_logits.astype(jnp.float32), aw)
    flat = up.reshape(-1, C)
    fl = label.reshape(-1)
    mask = (fl >= 0) & (fl < n_classes)
    lse = jax.scipy.special.logsumexp(flat, axis=-1)
    picked = jnp.take_along_axis(flat, jnp.clip(fl, 0, C - 1)[:, None], axis=1)[:, 0]
    return jnp.sum((lse - picked) * mask) / jnp.sum(mask)


if __name__ == "__main__":
    key = jax.random.PRNGKey(0)
    k1, k2 = jax.random.split(key)

    N, C, h, w = 2, 4, 8, 8        # logits resolution
    H, W = 16, 16                  # label resolution
    n_classes = C

    logits = jax.random.normal(k1, (N, C, h, w), dtype=jnp.float32)
    # labels in [-1, n_classes]; -1 and n_classes are invalid and must be masked out
    label = jax.random.randint(k2, (N, H, W), -1, n_classes + 1, dtype=jnp.int32)

    loss = linear_loss(logits, label, n_classes)
    jax.block_until_ready(loss)

    ref = linear_loss_ref(logits, label, n_classes)
    assert jnp.allclose(loss, ref, rtol=1e-5, atol=1e-5), (loss, ref)

    print("KERNEL_OK")
</pallas_src>

<mosaic_0001>
module attributes {stable_mosaic.version = 11 : i64} {
  func.func @_loss_kernel(%arg0: i32, %arg1: i32, %arg2: memref<1x32x8xf32, #tpu.memory_space<vmem>>, %arg3: memref<16x8xf32, #tpu.memory_space<vmem>>, %arg4: memref<8x128xf32, #tpu.memory_space<vmem>>, %arg5: memref<1x16x128xi32, #tpu.memory_space<vmem>>, %arg6: memref<1x1x1x128xf32, #tpu.memory_space<vmem>>, %arg7: memref<1x1x1x128xf32, #tpu.memory_space<vmem>>, %arg8: memref<32x128xf32, #tpu.memory_space<vmem>>) attributes {dimension_semantics = [#tpu.dimension_semantics<parallel>, #tpu.dimension_semantics<arbitrary>], iteration_bounds = array<i64: 2, 1>, scalar_prefetch = 0 : i64, scratch_operands = 1 : i64, tpu.core_type = #tpu.core_type<tc>, window_params = [{transform_indices = @transform_0, window_bounds = array<i64: 1, 32, 8>}, {transform_indices = @transform_1, window_bounds = array<i64: 16, 8>}, {pipeline_mode = #tpu.pipeline_mode<synchronous>, transform_indices = @transform_2, window_bounds = array<i64: 8, 128>}, {transform_indices = @transform_3, window_bounds = array<i64: 1, 16, 128>}, {transform_indices = @transform_4, window_bounds = array<i64: 1, 1, 1, 128>}, {transform_indices = @transform_5, window_bounds = array<i64: 1, 1, 1, 128>}]} {
    %c0_i32 = arith.constant 0 : i32
    %0 = arith.cmpi eq, %arg1, %c0_i32 : i32
    %1 = arith.extui %0 : i1 to i32
    %c0_i32_0 = arith.constant 0 : i32
    %2 = arith.cmpi ne, %1, %c0_i32_0 : i32
    scf.if %2 {
      %c0_27 = arith.constant 0 : index
      %c0_28 = arith.constant 0 : index
      %c0_29 = arith.constant 0 : index
      %77 = vector.load %arg2[%c0_27, %c0_28, %c0_29] : memref<1x32x8xf32, #tpu.memory_space<vmem>>, vector<1x32x8xf32>
      %78 = vector.shape_cast %77 : vector<1x32x8xf32> to vector<32x8xf32>
      %c0_30 = arith.constant 0 : index
      %c0_31 = arith.constant 0 : index
      %79 = vector.load %arg4[%c0_30, %c0_31] : memref<8x128xf32, #tpu.memory_space<vmem>>, vector<8x128xf32>
      %cst_32 = arith.constant dense<0.000000e+00> : vector<32x128xf32>
      %80 = tpu.matmul %78, %79, %cst_32 {dimension_numbers = #tpu.dot_dimension_numbers<[1], [0], [0], [1], [0, 0, 1, 1], [], []>} : vector<32x8xf32>, vector<8x128xf32>, vector<32x128xf32> -> vector<32x128xf32>
      %c0_33 = arith.constant 0 : index
      %c0_34 = arith.constant 0 : index
      %81 = vector.load %arg8[%c0_33, %c0_34] : memref<32x128xf32, #tpu.memory_space<vmem>>, vector<32x128xf32>
      tpu.vector_store %arg8[%c0_33, %c0_34], %80 {strides = array<i32>} : memref<32x128xf32, #tpu.memory_space<vmem>>, vector<32x128xf32>,
    } else {
    }
    %c0 = arith.constant 0 : index
    %c0_1 = arith.constant 0 : index
    %3 = vector.load %arg3[%c0, %c0_1] : memref<16x8xf32, #tpu.memory_space<vmem>>, vector<16x8xf32>
    %c0_2 = arith.constant 0 : index
    %c0_3 = arith.constant 0 : index
    %c0_4 = arith.constant 0 : index
    %4 = vector.load %arg5[%c0_2, %c0_3, %c0_4] : memref<1x16x128xi32, #tpu.memory_space<vmem>>, vector<1x16x128xi32>
    %5 = vector.shape_cast %4 : vector<1x16x128xi32> to vector<16x128xi32>
    %cst = arith.constant 0.000000e+00 : f32
    %6 = vector.broadcast %cst : f32 to vector<16x128xf32>
    %cst_5 = arith.constant 0xFF800000 : f32
    %7 = vector.broadcast %cst_5 : f32 to vector<16x128xf32>
    %c0_6 = arith.constant 0 : index
    %c0_7 = arith.constant 0 : index
    %8 = vector.load %arg8[%c0_6, %c0_7] : memref<32x128xf32, #tpu.memory_space<vmem>>, vector<8x128xf32>
    %cst_8 = arith.constant dense<0.000000e+00> : vector<16x128xf32>
    %9 = tpu.matmul %3, %8, %cst_8 {dimension_numbers = #tpu.dot_dimension_numbers<[1], [0], [0], [1], [0, 0, 1, 1], [], []>} : vector<16x8xf32>, vector<8x128xf32>, vector<16x128xf32> -> vector<16x128xf32>
    %10 = arith.maximumf %7, %9 : vector<16x128xf32>
    %11 = arith.subf %7, %10 : vector<16x128xf32>
    %12 = math.exp %11 : vector<16x128xf32>
    %13 = arith.mulf %6, %12 : vector<16x128xf32>
    %14 = arith.subf %9, %10 : vector<16x128xf32>
    %15 = math.exp %14 : vector<16x128xf32>
    %16 = arith.addf %13, %15 : vector<16x128xf32>
    %c0_i32_9 = arith.constant 0 : i32
    %17 = vector.broadcast %c0_i32_9 : i32 to vector<16x128xi32>
    %18 = arith.cmpi eq, %5, %17 : vector<16x128xi32>
    %19 = arith.select %18, %9, %6 : vector<16x128xi1>, vector<16x128xf32>
    %c8 = arith.constant 8 : index
    %c0_10 = arith.constant 0 : index
    %20 = vector.load %arg8[%c8, %c0_10] : memref<32x128xf32, #tpu.memory_space<vmem>>, vector<8x128xf32>
    %cst_11 = arith.constant dense<0.000000e+00> : vector<16x128xf32>
    %21 = tpu.matmul %3, %20, %cst_11 {dimension_numbers = #tpu.dot_dimension_numbers<[1], [0], [0], [1], [0, 0, 1, 1], [], []>} : vector<16x8xf32>, vector<8x128xf32>, vector<16x128xf32> -> vector<16x128xf32>
    %22 = arith.maximumf %10, %21 : vector<16x128xf32>
    %23 = arith.subf %10, %22 : vector<16x128xf32>
    %24 = math.exp %23 : vector<16x128xf32>
    %25 = arith.mulf %16, %24 : vector<16x128xf32>
    %26 = arith.subf %21, %22 : vector<16x128xf32>
    %27 = math.exp %26 : vector<16x128xf32>
    %28 = arith.addf %25, %27 : vector<16x128xf32>
    %c1_i32 = arith.constant 1 : i32
    %29 = vector.broadcast %c1_i32 : i32 to vector<16x128xi32>
    %30 = arith.cmpi eq, %5, %29 : vector<16x128xi32>
    %31 = arith.select %30, %21, %19 : vector<16x128xi1>, vector<16x128xf32>
    %c16 = arith.constant 16 : index
    %c0_12 = arith.constant 0 : index
    %32 = vector.load %arg8[%c16, %c0_12] : memref<32x128xf32, #tpu.memory_space<vmem>>, vector<8x128xf32>
    %cst_13 = arith.constant dense<0.000000e+00> : vector<16x128xf32>
    %33 = tpu.matmul %3, %32, %cst_13 {dimension_numbers = #tpu.dot_dimension_numbers<[1], [0], [0], [1], [0, 0, 1, 1], [], []>} : vector<16x8xf32>, vector<8x128xf32>, vector<16x128xf32> -> vector<16x128xf32>
    %34 = arith.maximumf %22, %33 : vector<16x128xf32>
    %35 = arith.subf %22, %34 : vector<16x128xf32>
    %36 = math.exp %35 : vector<16x128xf32>
    %37 = arith.mulf %28, %36 : vector<16x128xf32>
    %38 = arith.subf %33, %34 : vector<16x128xf32>
    %39 = math.exp %38 : vector<16x128xf32>
    %40 = arith.addf %37, %39 : vector<16x128xf32>
    %c2_i32 = arith.constant 2 : i32
    %41 = vector.broadcast %c2_i32 : i32 to vector<16x128xi32>
    %42 = arith.cmpi eq, %5, %41 : vector<16x128xi32>
    %43 = arith.select %42, %33, %31 : vector<16x128xi1>, vector<16x128xf32>
    %c24 = arith.constant 24 : index
    %c0_14 = arith.constant 0 : index
    %44 = vector.load %arg8[%c24, %c0_14] : memref<32x128xf32, #tpu.memory_space<vmem>>, vector<8x128xf32>
    %cst_15 = arith.constant dense<0.000000e+00> : vector<16x128xf32>
    %45 = tpu.matmul %3, %44, %cst_15 {dimension_numbers = #tpu.dot_dimension_numbers<[1], [0], [0], [1], [0, 0, 1, 1], [], []>} : vector<16x8xf32>, vector<8x128xf32>, vector<16x128xf32> -> vector<16x128xf32>
    %46 = arith.maximumf %34, %45 : vector<16x128xf32>
    %47 = arith.subf %34, %46 : vector<16x128xf32>
    %48 = math.exp %47 : vector<16x128xf32>
    %49 = arith.mulf %40, %48 : vector<16x128xf32>
    %50 = arith.subf %45, %46 : vector<16x128xf32>
    %51 = math.exp %50 : vector<16x128xf32>
    %52 = arith.addf %49, %51 : vector<16x128xf32>
    %c3_i32 = arith.constant 3 : i32
    %53 = vector.broadcast %c3_i32 : i32 to vector<16x128xi32>
    %54 = arith.cmpi eq, %5, %53 : vector<16x128xi32>
    %55 = arith.select %54, %45, %43 : vector<16x128xi1>, vector<16x128xf32>
    %56 = math.log %52 : vector<16x128xf32>
    %57 = arith.addf %46, %56 : vector<16x128xf32>
    %c0_i32_16 = arith.constant 0 : i32
    %58 = vector.broadcast %c0_i32_16 : i32 to vector<16x128xi32>
    %59 = arith.cmpi sge, %5, %58 : vector<16x128xi32>
    %c4_i32 = arith.constant 4 : i32
    %60 = vector.broadcast %c4_i32 : i32 to vector<16x128xi32>
    %61 = arith.cmpi slt, %5, %60 : vector<16x128xi32>
    %62 = arith.andi %59, %61 : vector<16x128xi1>
    %63 = arith.extui %62 : vector<16x128xi1> to vector<16x128xi32>
    %64 = arith.sitofp %63 : vector<16x128xi32> to vector<16x128xf32>
    %65 = arith.subf %57, %55 : vector<16x128xf32>
    %66 = arith.mulf %65, %64 : vector<16x128xf32>
    %cst_17 = arith.constant dense<0.000000e+00> : vector<128xf32>
    %67 = vector.multi_reduction <add>, %66, %cst_17 [0] : vector<16x128xf32> to vector<128xf32>
    %68 = vector.shape_cast %67 : vector<128xf32> to vector<1x128xf32>
    %c0_18 = arith.constant 0 : index
    %c0_19 = arith.constant 0 : index
    %c0_20 = arith.constant 0 : index
    %c0_21 = arith.constant 0 : index
    %69 = vector.load %arg6[%c0_18, %c0_19, %c0_20, %c0_21] : memref<1x1x1x128xf32, #tpu.memory_space<vmem>>, vector<1x1x1x128xf32>
    %70 = vector.shape_cast %69 : vector<1x1x1x128xf32> to vector<1x128xf32>
    %71 = vector.shape_cast %68 : vector<1x128xf32> to vector<1x1x1x128xf32>
    tpu.vector_store %arg6[%c0_18, %c0_19, %c0_20, %c0_21], %71 {strides = array<i32>} : memref<1x1x1x128xf32, #tpu.memory_space<vmem>>, vector<1x1x1x128xf32>,
    %cst_22 = arith.constant dense<0.000000e+00> : vector<128xf32>
    %72 = vector.multi_reduction <add>, %64, %cst_22 [0] : vector<16x128xf32> to vector<128xf32>
    %73 = vector.shape_cast %72 : vector<128xf32> to vector<1x128xf32>
    %c0_23 = arith.constant 0 : index
    %c0_24 = arith.constant 0 : index
    %c0_25 = arith.constant 0 : index
    %c0_26 = arith.constant 0 : index
    %74 = vector.load %arg7[%c0_23, %c0_24, %c0_25, %c0_26] : memref<1x1x1x128xf32, #tpu.memory_space<vmem>>, vector<1x1x1x128xf32>
    %75 = vector.shape_cast %74 : vector<1x1x1x128xf32> to vector<1x128xf32>
    %76 = vector.shape_cast %73 : vector<1x128xf32> to vector<1x1x1x128xf32>
    tpu.vector_store %arg7[%c0_23, %c0_24, %c0_25, %c0_26], %76 {strides = array<i32>} : memref<1x1x1x128xf32, #tpu.memory_space<vmem>>, vector<1x1x1x128xf32>,
    return
  }
  func.func @transform_0(%arg0: i32, %arg1: i32) -> (i32, i32, i32) {
    %c0_i32 = arith.constant 0 : i32
    %c0_i32_0 = arith.constant 0 : i32
    %c0_i32_1 = arith.constant 0 : i32
    return %arg0, %c0_i32, %c0_i32_0 : i32, i32, i32
  }
  func.func @transform_1(%arg0: i32, %arg1: i32) -> (i32, i32) {
    %c0_i32 = arith.constant 0 : i32
    %c0_i32_0 = arith.constant 0 : i32
    return %arg1, %c0_i32 : i32, i32
  }
  func.func @transform_2(%arg0: i32, %arg1: i32) -> (i32, i32) {
    %c0_i32 = arith.constant 0 : i32
    %c0_i32_0 = arith.constant 0 : i32
    %c0_i32_1 = arith.constant 0 : i32
    return %c0_i32, %c0_i32_0 : i32, i32
  }
  func.func @transform_3(%arg0: i32, %arg1: i32) -> (i32, i32, i32) {
    %c0_i32 = arith.constant 0 : i32
    %c0_i32_0 = arith.constant 0 : i32
    return %arg0, %arg1, %c0_i32 : i32, i32, i32
  }
  func.func @transform_4(%arg0: i32, %arg1: i32) -> (i32, i32, i32, i32) {
    %c0_i32 = arith.constant 0 : i32
    %c0_i32_0 = arith.constant 0 : i32
    %c0_i32_1 = arith.constant 0 : i32
    return %arg0, %arg1, %c0_i32, %c0_i32_0 : i32, i32, i32, i32
  }
  func.func @transform_5(%arg0: i32, %arg1: i32) -> (i32, i32, i32, i32) {
    %c0_i32 = arith.constant 0 : i32
    %c0_i32_0 = arith.constant 0 : i32
    %c0_i32_1 = arith.constant 0 : i32
    return %arg0, %arg1, %c0_i32, %c0_i32_0 : i32, i32, i32, i32
  }
}

</mosaic_0001>

<bundles_post_ra>
// kernel: tpu_custom_call.1
= control target key start
LH: loop header
LB: loop body
LE: loop exit
PB: predicated region body
PF: predicated region fallthrough
CT: control target
= control target key end

     0   :  { %11 = vsyncpa [#allocation4], 0  ;;  %s1259_s0 = inlined_call_operand.vmem [shape: f32[2,32,8], index: 0, kind: input, shape index: {}]   ;;  %s1260_s1 = inlined_call_operand.vmem [shape: f32[16,8], index: 1, kind: input, shape index: {}]   ;;  %s1261_s2 = inlined_call_operand.vmem [shape: f32[8,128], index: 2, kind: input, shape index: {}]   ;;  %s1262_s3 = inlined_call_operand.vmem [shape: s32[2,16,128], index: 3, kind: input, shape index: {}]   ;;  %s1263_s4 = inlined_call_operand.hbm [shape: f32[2,1,1,128], index: 4, kind: output, shape index: {0}]   ;;  %s1264_s5 = inlined_call_operand.hbm [shape: f32[2,1,1,128], index: 5, kind: output, shape index: {1}]  }
   0x1   :  { %13 = vsyncpa [#allocation4 + $0x1], 0 }
   0x2   :  { %14 = vsyncpa [#allocation6], 0 }
   0x3   :  { %16 = vsyncpa [#allocation6 + $0x1], 0  ;;  %s1018_s18 = smov 0   ;;  %s1020_s19 = smov 0  }
   0x4   :  { %s1022_s20 = smov 0   ;;  %s1024_s21 = smov 0  }
   0x5   :  { %s1026_s22 = smov 0   ;;  %s1028_s23 = smov 0  }
   0x6 LB: > { %s748_s24 = sadd.s32 4294967295, %s985_s23   ;;  %s749_s25 = sadd.s32 4294967294, %s985_s23   ;;  %s985_s23 = sphi %s1028_s23, %s22_s23   ;;  %s981_s22 = sphi %s1026_s22, %s1273_s22   ;;  %s977_s21 = sphi %s1024_s21, %s1272_s21   ;;  %s973_s20 = sphi %s1022_s20, %s1271_s20   ;;  %s969_s19 = sphi %s1020_s19, %s1270_s19   ;;  %s965_s18 = sphi %s1018_s18, %s1269_s18  }
   0x7   : > { %s34_s26 = sadd.s32 1, %s981_s22  ;;  %s144_s27 = sadd.s32 1, %s973_s20 }
   0x8   : > { %p36_p0 = scmp.ge.s32.totalorder %s34_s26, 2  ;;  %p154_p1 = scmp.ne.s32.totalorder %s973_s20, %s969_s19 }
   0x9   : > { %p155_p2 = scmp.eq.s32.totalorder %s748_s24, 1  ;;  %p160_p3 = scmp.ne.s32.totalorder %s969_s19, %s965_s18 }
   0xa   : > { %s1275_s26 = smov (%p36_p0, %s34_s26), 0  ;;  %p161_p5 = scmp.eq.s32.totalorder %s749_s25, 1 }
   0xb   : > { %p1058_p4 = por %p155_p2, %p154_p1  ;;  %s139_s29 = ssub.s32 %s981_s22, %s1275_s26 }
   0xc   : > { %p753_p6 = scmp.ge.s32.totalorder %s985_s23, 1  ;;  %p142_p7 = scmp.eq.s32.totalorder %s139_s29, 0 }
   0xd   : > { %p1065_p8 = por %p161_p5, %p160_p3  ;;  %p240_p9 = scmp.lt.s32.totalorder %s985_s23, 3 }
   0xe   : > { %s1071_s6 = scalar_select %p142_p7, %s973_s20, %s144_s27  }
   0xf   : > { %p241_p10 = pnand %p753_p6, %p240_p9 }
  0x10   : > { %p285_p11 = scmp.lt.s32.totalorder (!%p241_p10), %s977_s21, 1  ;;  %s1175_s7 = sand.u32 (!%p241_p10), 1, %s969_s19  }
  0x11   : > { %244 = sbr.rel (%p241_p10) target bundleno = 363 (0x16b), region = 36  ;;  %s284_s11 = scalar_lea.vmem (!%p241_p10), [#allocation5], %s1175_s7 }
  0x12   : > { %s1182_s12 = sshll.u32 (!%p241_p10), %s284_s11, 4  ;;  %s595_s14 = scalar_lea.sflag (!%p241_p10), [#allocation6], %s1175_s7  ;;  %s621_s12 = int_to_ptr.vmem [resolvable:$true] %s1182_s12 }
  0x13   : > { %s895_s25 = scalar_lea.hbm (!%p241_p10), %s1264_s5, 2 }
  0x16   : > { %v314_v0 = vld [vmem:[%s1261_s2] sm:$0xff]  ;;  %s1078_s9 = scalar_select %p285_p11, %s977_s21, 1  ;;  %vm315_vm0 = vcmask 64512   ;;  %v362_v5 = vld [vmem:[%s1260_s1 + $0x8] sm:$0xff] }
  0x17   : > { %343 = vmatpush.msra.mxu0 %v314_v0  ;;  %776 = vmatpush.msra.mxu2 %v314_v0  ;;  %v361_v7 = vld [vmem:[%s1260_s1] sm:$0xff] }
  0x18   : > { %s774_s10 = sshll.u32 %s1078_s9, 5  ;;  %s775_s24 = sshll.u32 %s1078_s9, 4 }
  0x19   : > { %s289_s13 = scalar_lea.vmem %s1259_s0, %s774_s10  ;;  %s304_s29 = scalar_lea.vmem %s1262_s3, %s775_s24 }
  0x1a   : > { %v310_v1 = vld [vmem:[%s289_s13] sm:$0xff]  ;;  %v313_v2 = vld [vmem:[%s289_s13 + $0x18] sm:$0xff]  ;;  %v311_v3 = vld [vmem:[%s289_s13 + $0x8] sm:$0xff]  ;;  %s618_s10 = scalar_lea.hbm %s1264_s5, %s977_s21 }
  0x1b   : > { %758 = vmatmul.msk.f32.vlgmr.msra.gmra.mxu0 %vm315_vm0, %v310_v1  ;;  %761 = vmatmul.msk.f32.vlgmr.msra.gmra.mxu2 %vm315_vm0, %v313_v2  ;;  %v312_v4 = vld [vmem:[%s289_s13 + $0x10] sm:$0xff]  ;;  %v1140_v48 = vld [vmem:[%s304_s29] sm:$0xff]  ;;  %v1142_v50 = vld [vmem:[%s304_s29 + $0x8] sm:$0xff]  ;;  %s1184_s13 = sshll.u32 %s618_s10, 4  ;;  %s623_s13 = int_to_ptr.hbm [resolvable:$true] %s1184_s13 }
  0x1c   : > { %vm560_vm1 = vcmp.ge.s32.totalorder %v1140_v48, 0  ;;  %vm562_vm2 = vcmp.lt.s32.totalorder %v1140_v48, 4  ;;  %vm561_vm3 = vcmp.ge.s32.totalorder %v1142_v50, 0  ;;  %vm563_vm4 = vcmp.lt.s32.totalorder %v1142_v50, 4  ;;  %s889_s15 = sshra.s32 %s623_s13, 4  ;;  %s890_s15 = int_to_ptr.hbm [resolvable:$true] %s889_s15 }
  0x1d   : > { %vm1155_vm5 = vmand %vm560_vm1, %vm562_vm2  ;;  %vm412_vm7 = vcmp.eq.s32.totalorder %v1140_v48, 0  ;;  %vm458_vm8 = vcmp.eq.s32.totalorder %v1140_v48, 1  ;;  %s891_s16 = scalar_lea.hbm %s890_s15, 1  ;;  %p896_p1 = scmp.lt.s32.totalorder %s890_s15, %s1264_s5 }
  0x1e   : > { %vm565_vm6 = vmand %vm561_vm3, %vm563_vm4  ;;  %p892_p12 = scmp.ne.s32.totalorder %s890_s15, %s891_s16  ;;  %p897_p2 = scmp.lt.s32.totalorder %s895_s25, %s891_s16 }
  0x20   : > { %p893_p13 = pnand %p892_p12, %p1058_p4  ;;  %p898_p3 = por %p897_p2, %p896_p1 }
  0x22   : > { %p894_p0 = pneg %p893_p13 }
  0x23   : > { %759 = vmatmul.msk.f32.gmra.mxu0 %vm315_vm0, %v311_v3 }
  0x24   : > { %p899_p5 = pnand %p898_p3, %p894_p0 }
  0x2b   : > { %760 = vmatmul.msk.f32.gmra.mxu0 %vm315_vm0, %v312_v4 }
  0x98   : > { %v345_v6 = vpop.f32.mrf.mxu0 }
  0x99   : > { %388 = vmatpush.msra.mxu1 %v345_v6  ;;  %777 = vmatpush.msra.mxu3 %v345_v6 }
  0x9a   : > { %763 = vmatmul.msk.f32.vlgmr.msra.gmra.mxu3 %vm315_vm0, %v362_v5  ;;  %762 = vmatmul.msk.f32.vlgmr.msra.gmra.mxu1 %vm315_vm0, %v361_v7 }
  0x9e   : > { %v354_v8 = vpop.f32.mrf.mxu2 }
  0x9f   : > { %524 = vmatpush.msrb.mxu1 %v354_v8  ;;  %v987_v8 = vmov 0.0  }
  0xa0   : > { %v348_v9 = vpop.f32.mrf.mxu0 }
  0xa1   : > { %432 = vmatpush.msrb.mxu2 %v348_v9  ;;  %v1168_v9 = vsel %vm1155_vm5, 1.0, %v987_v8 }
  0xa2   : > { %764 = vmatmul.msk.f32.vlgmr.msrb.gmra.mxu2 %vm315_vm0, %v361_v7  ;;  %768 = vmatmul.msk.f32.vlgmr.msrb.gmra.mxu1 %vm315_vm0, %v361_v7 }
  0xa8   : > { %v351_v10 = vpop.f32.mrf.mxu0 }
  0xa9   : > { %478 = vmatpush.msrb.mxu3 %v351_v10 }
  0xaa   : > { %765 = vmatmul.msk.f32.gmra.mxu2 %vm315_vm0, %v362_v5  ;;  %766 = vmatmul.msk.f32.vlgmr.msrb.gmra.mxu3 %vm315_vm0, %v361_v7 }
  0xab   : > { %769 = vmatmul.msk.f32.gmra.mxu1 %vm315_vm0, %v362_v5 }
  0xb2   : > { %767 = vmatmul.msk.f32.gmra.mxu3 %vm315_vm0, %v362_v5 }
 0x117   : > { %v1102_v11 = vpop.f32.mrf.mxu1 }
 0x118   : > { %v396_v12 = vsub.f32 -inf, %v1102_v11  ;;  %v404_v15 = vsub.f32 %v1102_v11, %v1102_v11 }
 0x11a   : > { %v398_v14 = vmul.f32 1.442695, %v396_v12  ;;  %v406_v18 = vmul.f32 1.442695, %v404_v15  ;;  %v1170_v12 = vsel %vm565_vm6, 1.0, %v987_v8 }
 0x11c   : > { %839 = vpow2.f32 %v398_v14 }
 0x11d   : > { %v1105_v13 = vpop.f32.mrf.mxu3  ;;  %841 = vpow2.f32 %v406_v18  ;;  %v582_v18 = vadd.f32 %v1170_v12, %v1168_v9 }
 0x11e   : > { %v397_v16 = vsub.f32 -inf, %v1105_v13  ;;  %v405_v22 = vsub.f32 %v1105_v13, %v1105_v13 }
 0x11f   : > { %v1118_v25 = vpop.f32.mrf.mxu1 }
 0x120   : > { %v400_v21 = vmul.f32 1.442695, %v397_v16  ;;  %v408_v27 = vmul.f32 1.442695, %v405_v22 }
 0x122   : > { %v840_v26 = vpop.eup %839  ;;  %843 = vpow2.f32 %v400_v21 }
 0x123   : > { %v402_v33 = vmul.f32 0.0, %v840_v26  ;;  %v842_v34 = vpop.eup %841 }
 0x125   : > { %v1110_v17 = vpop.f32.mrf.mxu2  ;;  %v410_v43 = vadd.f32 %v842_v34, %v402_v33 }
 0x126   : > { %v440_v19 = vmax.f32 %v1102_v11, %v1110_v17 }
 0x128   : > { %v442_v20 = vsub.f32 %v1102_v11, %v440_v19  ;;  %v450_v24 = vsub.f32 %v1110_v17, %v440_v19  ;;  %v844_v42 = vpop.eup %843  ;;  %v1148_v53 = vpop.f32.mrf.mxu1 }
 0x129   : > { %v403_v56 = vmul.f32 0.0, %v844_v42 }
 0x12a   : > { %v444_v23 = vmul.f32 1.442695, %v442_v20  ;;  %v452_v30 = vmul.f32 1.442695, %v450_v24 }
 0x12c   : > { %845 = vpow2.f32 %v444_v23  ;;  %v583_v23 = vrot.slane %v582_v18, 4 }
 0x12d   : > { %v1120_v28 = vpop.f32.mrf.mxu2  ;;  %v1122_v29 = vpop.f32.mrf.mxu3  ;;  %847 = vpow2.f32 %v408_v27 }
 0x12e   : > { %v441_v31 = vmax.f32 %v1105_v13, %v1120_v28  ;;  %v486_v32 = vmax.f32 %v440_v19, %v1122_v29  ;;  %849 = vpow2.f32 %v452_v30  ;;  %v584_v30 = vadd.f32 %v583_v23, %v582_v18 }
 0x130   : > { %v443_v35 = vsub.f32 %v1105_v13, %v441_v31  ;;  %v451_v36 = vsub.f32 %v1120_v28, %v441_v31  ;;  %v488_v37 = vsub.f32 %v440_v19, %v486_v32  ;;  %v496_v38 = vsub.f32 %v1122_v29, %v486_v32 }
 0x131   : > { %v1132_v39 = vmax.f32 %v486_v32, %v1118_v25  ;;  %v585_v34 = vrot.slane %v584_v30, 2 }
 0x132   : > { %v446_v40 = vmul.f32 1.442695, %v443_v35  ;;  %v490_v41 = vmul.f32 1.442695, %v488_v37  ;;  %v454_v44 = vmul.f32 1.442695, %v451_v36  ;;  %v846_v47 = vpop.eup %845 }
 0x133   : > { %v534_v45 = vsub.f32 %v486_v32, %v1132_v39  ;;  %v542_v46 = vsub.f32 %v1118_v25, %v1132_v39  ;;  %v498_v49 = vmul.f32 1.442695, %v496_v38  ;;  %v848_v55 = vpop.eup %847  ;;  %v448_v57 = vmul.f32 %v846_v47, %v410_v43 }
 0x134   : > { %851 = vpow2.f32 %v446_v40  ;;  %v850_v59 = vpop.eup %849  ;;  %v411_v5 = vadd.f32 %v848_v55, %v403_v56  ;;  %v586_v37 = vadd.f32 %v585_v34, %v584_v30 }
 0x135   : > { %v536_v51 = vmul.f32 1.442695, %v534_v45  ;;  %v1146_v52 = vpop.f32.mrf.mxu3  ;;  %853 = vpow2.f32 %v490_v41  ;;  %v544_v58 = vmul.f32 1.442695, %v542_v46  ;;  %v456_v6 = vadd.f32 %v850_v59, %v448_v57 }
 0x136   : > { %v487_v54 = vmax.f32 %v441_v31, %v1146_v52  ;;  %855 = vpow2.f32 %v454_v44  ;;  %v587_v41 = vrot.slane %v586_v37, 1  ;;  %v414_v46 = vsel %vm412_vm7, %v1102_v11, 0.0 }
 0x137   : > { %857 = vpow2.f32 %v498_v49 }
 0x138   : > { %v489_v61 = vsub.f32 %v441_v31, %v487_v54  ;;  %v497_v62 = vsub.f32 %v1146_v52, %v487_v54  ;;  %v1161_v63 = vmax.f32 %v487_v54, %v1148_v53  ;;  %859 = vpow2.f32 %v536_v51 }
 0x139   : > { %861 = vpow2.f32 %v544_v58  ;;  %v588_v44 = vadd.f32 %v587_v41, %v586_v37 }
 0x13a   : > { %v852_v0 = vpop.eup %851  ;;  %v492_v1 = vmul.f32 1.442695, %v489_v61  ;;  %v500_v2 = vmul.f32 1.442695, %v497_v62  ;;  %v535_v3 = vsub.f32 %v487_v54, %v1161_v63  ;;  %v543_v4 = vsub.f32 %v1148_v53, %v1161_v63 }
 0x13b   : > { %v854_v7 = vpop.eup %853  ;;  %v449_v15 = vmul.f32 %v852_v0, %v411_v5  ;;  %589 = vst [vmem:[%s284_s11] sm:$0x1] %v588_v44 }
 0x13c   : > { %863 = vpow2.f32 %v492_v1  ;;  %v538_v10 = vmul.f32 1.442695, %v535_v3  ;;  %v856_v14 = vpop.eup %855  ;;  %v494_v16 = vmul.f32 %v854_v7, %v456_v6  ;;  %v546_v20 = vmul.f32 1.442695, %v543_v4 }
 0x13d   : > { %v858_v19 = vpop.eup %857  ;;  %865 = vpow2.f32 %v500_v2  ;;  %v457_v26 = vadd.f32 %v856_v14, %v449_v15 }
 0x13e   : > { %v860_v21 = vpop.eup %859  ;;  %v502_v22 = vadd.f32 %v858_v19, %v494_v16  ;;  %867 = vpow2.f32 %v538_v10 }
 0x13f   : > { %v862_v24 = vpop.eup %861  ;;  %869 = vpow2.f32 %v546_v20 }
 0x140   : > { %v540_v27 = vmul.f32 %v860_v21, %v502_v22 }
 0x142   : > { %v864_v31 = vpop.eup %863  ;;  %v548_v32 = vadd.f32 %v862_v24, %v540_v27 }
 0x143   : > { %v495_v33 = vmul.f32 %v864_v31, %v457_v26  ;;  %v866_v35 = vpop.eup %865 }
 0x144   : > { %871 = vlog2.f32 %v548_v32  ;;  %v868_v38 = vpop.eup %867 }
 0x145   : > { %v503_v36 = vadd.f32 %v866_v35, %v495_v33  ;;  %v870_v42 = vpop.eup %869 }
 0x147   : > { %v541_v40 = vmul.f32 %v868_v38, %v503_v36 }
 0x149   : > { %v549_v43 = vadd.f32 %v870_v42, %v541_v40 }
 0x14a   : > { %v872_v45 = vpop.eup %871 }
 0x14b   : > { %873 = vlog2.f32 %v549_v43  ;;  %v555_v47 = vmul.f32 0.6931472, %v872_v45 }
 0x14c   : > { %902 = shalt.err (!%p899_p5)
}
 0x14d   : > { %779 = dma.vmem_to_hbm [thread:$0]  (%p1058_p4), %s621_s12, 16, %s623_s13, %s595_s14   ;;  %vm413_vm9 = vcmp.eq.s32.totalorder %v1142_v50, 0  ;;  %vm504_vm10 = vcmp.eq.s32.totalorder %v1140_v48, 2  ;;  %vm459_vm11 = vcmp.eq.s32.totalorder %v1142_v50, 1  ;;  %v460_v11 = vsel %vm458_vm8, %v1110_v17, %v414_v46 }
 0x14e   : > { %vm505_vm12 = vcmp.eq.s32.totalorder %v1142_v50, 2  ;;  %v415_v49 = vsel %vm413_vm9, %v1105_v13, 0.0  ;;  %v506_v51 = vsel %vm504_vm10, %v1122_v29, %v460_v11  ;;  %vm550_vm13 = vcmp.eq.s32.totalorder %v1140_v48, 3  ;;  %s604_s10 = scalar_lea.hbm %s1263_s4, %s977_s21  ;;  %s278_s11 = scalar_lea.vmem [#allocation3], %s1175_s7 }
 0x14f   : > { %v558_v54 = vadd.f32 %v555_v47, %v1132_v39  ;;  %v461_v56 = vsel %vm459_vm11, %v1120_v28, %v415_v49  ;;  %vm551_vm14 = vcmp.eq.s32.totalorder %v1142_v50, 3  ;;  %v552_v58 = vsel %vm550_vm13, %v1118_v25, %v506_v51  ;;  %s606_s12 = sshll.u32 %s278_s11, 4  ;;  %s608_s13 = sshll.u32 %s604_s10, 4  ;;  %s607_s12 = int_to_ptr.vmem [resolvable:$true] %s606_s12  ;;  %s609_s13 = int_to_ptr.hbm [resolvable:$true] %s608_s13 }
 0x150   : > { %v507_v57 = vsel %vm505_vm12, %v1146_v52, %v461_v56  ;;  %s591_s14 = scalar_lea.sflag [#allocation4], %s1175_s7  ;;  %s917_s15 = sshra.s32 %s609_s13, 4  ;;  %s918_s15 = int_to_ptr.hbm [resolvable:$true] %s917_s15 }
 0x151   : > { %v874_v55 = vpop.eup %873  ;;  %v570_v59 = vsub.f32 %v558_v54, %v552_v58  ;;  %v553_v29 = vsel %vm551_vm14, %v1148_v53, %v507_v57  ;;  %s919_s16 = scalar_lea.hbm %s918_s15, 1  ;;  %s923_s21 = scalar_lea.hbm %s1263_s4, 2 }
 0x152   : > { %v557_v17 = vmul.f32 0.6931472, %v874_v55  ;;  %p920_p6 = scmp.ne.s32.totalorder %s918_s15, %s919_s16  ;;  %p924_p10 = scmp.lt.s32.totalorder %s918_s15, %s1263_s4 }
 0x153   : > { %v572_v39 = vmul.f32 %v1168_v9, %v570_v59  ;;  %p925_p11 = scmp.lt.s32.totalorder %s923_s21, %s919_s16 }
 0x154   : > { %v559_v13 = vadd.f32 %v557_v17, %v1161_v63  ;;  %p921_p7 = pnand %p920_p6, %p1058_p4 }
 0x155   : > { %p926_p12 = por %p925_p11, %p924_p10 }
 0x156   : > { %v571_v48 = vsub.f32 %v559_v13, %v553_v29  ;;  %p922_p9 = pneg %p921_p7 }
 0x158   : > { %v573_v60 = vmul.f32 %v1170_v12, %v571_v48  ;;  %p927_p13 = pnand %p926_p12, %p922_p9 }
 0x15a   : > { %v574_v28 = vadd.f32 %v573_v60, %v572_v39 }
 0x15c   : > { %v575_v61 = vrot.slane %v574_v28, 4 }
 0x15e   : > { %v576_v52 = vadd.f32 %v575_v61, %v574_v28 }
 0x160   : > { %v577_v62 = vrot.slane %v576_v52, 2 }
 0x162   : > { %v578_v25 = vadd.f32 %v577_v62, %v576_v52 }
 0x164   : > { %v579_v50 = vrot.slane %v578_v25, 1 }
 0x166   : > { %v580_v53 = vadd.f32 %v579_v50, %v578_v25 }
 0x168   : > { %581 = vst [vmem:[%s278_s11] sm:$0x1] %v580_v53 }
 0x169   : > { %930 = shalt.err (!%p927_p13)
}
 0x16a   : > { %778 = dma.vmem_to_hbm [thread:$0]  (%p1058_p4), %s607_s12, 16, %s609_s13, %s591_s14  }
 0x16b PF: > { %p789_p0 = scmp.ge.s32.totalorder %s985_s23, 2  ;;  %s634_s7 = sand.u32 1, %s965_s18  }
 0x16c   : > { %s635_s29 = scalar_lea.sflag [#allocation4], %s634_s7 }
 0x16d   : > { %p783_p1 = pnand %p789_p0, %p1065_p8 }
 0x16f   : > { %p784_p2 = pneg %p783_p1 }
 0x171   : > { %956 = dma.done.wait (%p784_p2), %s635_s29, 16  }
 0x172   : > { %958 = vsyncadd (%p784_p2), %s635_s29, 4294967280  ;;  %s644_s8 = scalar_lea.sflag [#allocation6], %s634_s7 }
 0x173   : > { %960 = dma.done.wait (%p784_p2), %s644_s8, 16  }
 0x174   : > { %962 = vsyncadd (%p784_p2), %s644_s8, 4294967280  ;;  %s22_s23 = sadd.s32 1, %s985_s23   ;;  %s1269_s18 = smov %s969_s19 }
 0x175   : > { %p19_p3 = scmp.ge.s32.totalorder %s22_s23, 4   ;;  %s1270_s19 = smov %s973_s20 }
 0x176   : > { %s1271_s20 = smov %s1071_s6  ;;  %s1272_s21 = smov %s981_s22 }
 0x177   : > { %s1273_s22 = smov %s1275_s26  ;;  %21 = sbr.rel (!%p19_p3) target bundleno = 6 (0x6), region = 98 }
 0x17c   :  { %649 = vsyncpa [#allocation4], 1 }
 0x17d   :  { %651 = vsyncpa [#allocation4 + $0x1], 1 }
 0x17e   :  { %652 = vsyncpa [#allocation6], 1 }
 0x17f   :  { %654 = vsyncpa [#allocation6 + $0x1], 1 }

</bundles_post_ra>
